<compile_context>
chip_gen: v5e
topology: v5e:2x2
jax: 0.10.0
libtpu: 0.0.40
codegen_flags: <defaults>
</compile_context>

<pallas_src>
import functools

import jax
import jax.numpy as jnp
from jax.experimental import pallas as pl
from jax.experimental.pallas import tpu as pltpu


def _rmsnorm_kernel(x_ref, gamma_ref, o_ref, *, eps, inv_d):
    # x_ref: (tm, D) tile of input rows; gamma_ref: (1, D) f32; o_ref: (tm, D)
    x = x_ref[...].astype(jnp.float32)
    gamma = gamma_ref[...]                               # already f32, broadcasts
    sum_sq = jnp.sum(x * x, axis=-1, keepdims=True)      # (tm, 1) f32
    inv_rms = jax.lax.rsqrt(sum_sq * inv_d + eps)        # EUP rsqrt, no divide
    o_ref[...] = (x * gamma * inv_rms).astype(o_ref.dtype)


def _vmem_capacity_bytes():
    """Per-core VMEM capacity; conservative 64 MiB (v7x) if the query fails."""
    try:
        return int(pltpu.get_tpu_info().vmem_capacity_bytes)
    except Exception:
        return 64 * 1024 * 1024


def _pick_tiling(rows, d, dtype, vmem_cap):
    """Return (row_tile, buffer_count) for the streaming row grid."""
    itemsize = jnp.dtype(dtype).itemsize
    # Sublane packing: 8 rows for 32-bit, 16 for 16-bit, 32 for 8-bit dtypes.
    row_align = 32 if itemsize == 1 else (16 if itemsize == 2 else 8)

    # Triple-buffer on 128 MiB parts (v5e/v6e) to hide DMA jitter; double on v7x.
    buffers = 3 if vmem_cap >= 96 * 1024 * 1024 else 2

    # Working-set ceiling (<= ~0.5x VMEM): `buffers` input + `buffers` output
    # blocks in the input dtype, plus f32 temporaries for the f32 compute path
    # (~12 B/elem for sub-32-bit inputs: f32 cast of x + pre-cast product).
    temp_per_elem = 12 if itemsize < 4 else 8
    per_row_bytes = d * (2 * buffers * itemsize + temp_per_elem)
    budget_rows = max(row_align, (vmem_cap // 2) // max(per_row_bytes, 1))

    # Block-size floor: keep each in/out block >= ~6 MiB so the ~0.35 us/step
    # pipeline overhead stays amortized (streaming kernels hit ~85% roofline there).
    min_block_rows = -(-(6 * 1024 * 1024) // max(d * itemsize, 1))

    # Aim for >= 4 grid steps so v7x's two TensorCores split the rows and the
    # DMA pipeline always has a next/previous block to overlap with.
    target_steps = 4
    tile = min(budget_rows, max(min_block_rows, -(-rows // target_steps)))

    # Never collapse to a 1-step grid when the row count allows >= 2 aligned
    # blocks: a single full-extent block runs on one TC and kills pipelining.
    if rows > row_align:
        tile = min(tile, ((rows - 1) // row_align) * row_align)

    tile = max(row_align, (tile // row_align) * row_align)
    tile = min(tile, rows)
    return tile, buffers


def _block_spec(shape, index_map, buffers):
    """BlockSpec with optional N-deep buffering (falls back on older JAX)."""
    if buffers > 2:
        try:
            return pl.BlockSpec(shape, index_map, pipeline_mode=pl.Buffered(buffers))
        except TypeError:
            pass
    return pl.BlockSpec(shape, index_map)


def rmsnorm(x, gamma, eps=1e-5, *, row_tile=None):
    """x: (batch, seq, d_model), gamma: (d_model,). Returns same shape/dtype as x."""
    b, s, d = x.shape
    rows = b * s
    x2d = x.reshape(rows, d)
    gamma2d = gamma.astype(jnp.float32).reshape(1, d)

    vmem_cap = _vmem_capacity_bytes()
    auto_tile, buffers = _pick_tiling(rows, d, x.dtype, vmem_cap)
    if row_tile is None:
        row_tile = auto_tile

    grid = (pl.cdiv(rows, row_tile),)            # no jnp.pad: Pallas masks last block

    kernel = functools.partial(_rmsnorm_kernel, eps=float(eps), inv_d=1.0 / float(d))

    itemsize = jnp.dtype(x.dtype).itemsize
    cost = pl.CostEstimate(
        flops=4 * rows * d,                      # square + reduce + 2 scales per elem
        transcendentals=rows,                    # one rsqrt per row
        bytes_accessed=2 * rows * d * itemsize + 4 * d,
    )

    out2d = pl.pallas_call(
        kernel,
        out_shape=jax.ShapeDtypeStruct((rows, d), x.dtype),
        grid_spec=pltpu.PrefetchScalarGridSpec(
            num_scalar_prefetch=0,
            grid=grid,
            in_specs=[
                _block_spec((row_tile, d), lambda i: (i, 0), buffers),
                pl.BlockSpec((1, d), lambda i: (0, 0)),
            ],
            out_specs=_block_spec((row_tile, d), lambda i: (i, 0), buffers),
        ),
        compiler_params=pltpu.CompilerParams(
            dimension_semantics=("parallel",),   # rows are independent across TCs
            vmem_limit_bytes=int(vmem_cap * 3 // 4),
        ),
        cost_estimate=cost,
    )(x2d, gamma2d)

    return out2d.reshape(b, s, d)


if __name__ == "__main__":
    batch, seq, d_model = 2, 8, 32
    eps = 1e-5

    key = jax.random.PRNGKey(0)
    x = jax.random.normal(key, (batch, seq, d_model), dtype=jnp.float32)

    # Deterministic parameter init (matches nn.Parameter(torch.ones(d_model)))
    gamma = jnp.ones((d_model,), dtype=jnp.float32)

    out = rmsnorm(x, gamma, eps=eps)
    jax.block_until_ready(out)

    # Reference check in plain JAX (same math as the PyTorch forward)
    xf = x.astype(jnp.float32)
    rms = jnp.sqrt(jnp.mean(xf * xf, axis=-1, keepdims=True) + eps)
    ref = (xf * gamma) / rms
    assert out.shape == x.shape
    assert out.dtype == x.dtype
    assert jnp.allclose(out, ref.astype(x.dtype), atol=1e-5, rtol=1e-5)

    print("KERNEL_OK")
</pallas_src>

<mosaic_0001>
module attributes {stable_mosaic.version = 11 : i64} {
  func.func @_rmsnorm_kernel(%arg0: i32, %arg1: memref<8x32xf32, #tpu.memory_space<vmem>>, %arg2: memref<1x32xf32, #tpu.memory_space<vmem>>, %arg3: memref<8x32xf32, #tpu.memory_space<vmem>>) attributes {dimension_semantics = [#tpu.dimension_semantics<parallel>], iteration_bounds = array<i64: 2>, scalar_prefetch = 0 : i64, scratch_operands = 0 : i64, tpu.core_type = #tpu.core_type<tc>, window_params = [{transform_indices = @transform_0, window_bounds = array<i64: 8, 32>}, {pipeline_mode = #tpu.pipeline_mode<synchronous>, transform_indices = @transform_1, window_bounds = array<i64: 1, 32>}, {transform_indices = @transform_2, window_bounds = array<i64: 8, 32>}]} {
    %c0 = arith.constant 0 : index
    %c0_0 = arith.constant 0 : index
    %0 = vector.load %arg1[%c0, %c0_0] : memref<8x32xf32, #tpu.memory_space<vmem>>, vector<8x32xf32>
    %c0_1 = arith.constant 0 : index
    %c0_2 = arith.constant 0 : index
    %1 = vector.load %arg2[%c0_1, %c0_2] : memref<1x32xf32, #tpu.memory_space<vmem>>, vector<1x32xf32>
    %2 = arith.mulf %0, %0 : vector<8x32xf32>
    %cst = arith.constant dense<0.000000e+00> : vector<8xf32>
    %3 = vector.multi_reduction <add>, %2, %cst [1] : vector<8x32xf32> to vector<8xf32>
    %4 = vector.shape_cast %3 : vector<8xf32> to vector<8x1xf32>
    %cst_3 = arith.constant 3.125000e-02 : f32
    %5 = vector.broadcast %cst_3 : f32 to vector<8x1xf32>
    %6 = arith.mulf %4, %5 : vector<8x1xf32>
    %cst_4 = arith.constant 9.99999974E-6 : f32
    %7 = vector.broadcast %cst_4 : f32 to vector<8x1xf32>
    %8 = arith.addf %6, %7 : vector<8x1xf32>
    %9 = math.rsqrt %8 : vector<8x1xf32>
    %10 = vector.broadcast %1 : vector<1x32xf32> to vector<8x32xf32>
    %11 = arith.mulf %0, %10 : vector<8x32xf32>
    %12 = vector.broadcast %9 : vector<8x1xf32> to vector<8x32xf32>
    %13 = arith.mulf %11, %12 : vector<8x32xf32>
    %c0_5 = arith.constant 0 : index
    %c0_6 = arith.constant 0 : index
    %14 = vector.load %arg3[%c0_5, %c0_6] : memref<8x32xf32, #tpu.memory_space<vmem>>, vector<8x32xf32>
    tpu.vector_store %arg3[%c0_5, %c0_6], %13 {strides = array<i32>} : memref<8x32xf32, #tpu.memory_space<vmem>>, vector<8x32xf32>,
    return
  }
  func.func @transform_0(%arg0: i32) -> (i32, i32) {
    %c0_i32 = arith.constant 0 : i32
    %c0_i32_0 = arith.constant 0 : i32
    return %arg0, %c0_i32 : i32, i32
  }
  func.func @transform_1(%arg0: i32) -> (i32, i32) {
    %c0_i32 = arith.constant 0 : i32
    %c0_i32_0 = arith.constant 0 : i32
    %c0_i32_1 = arith.constant 0 : i32
    return %c0_i32, %c0_i32_0 : i32, i32
  }
  func.func @transform_2(%arg0: i32) -> (i32, i32) {
    %c0_i32 = arith.constant 0 : i32
    %c0_i32_0 = arith.constant 0 : i32
    return %arg0, %c0_i32 : i32, i32
  }
}

</mosaic_0001>

<bundles_post_ra>
// kernel: tpu_custom_call.1
= control target key start
LH: loop header
LB: loop body
LE: loop exit
PB: predicated region body
PF: predicated region fallthrough
CT: control target
= control target key end

     0   :  { %7 = vsyncpa [#allocation3], 0  ;;  %s659_s0 = inlined_call_operand.hbm [shape: f32[16,32], index: 0, kind: input, shape index: {}]   ;;  %s660_s1 = inlined_call_operand.hbm [shape: f32[1,32], index: 1, kind: input, shape index: {}]   ;;  %s661_s2 = inlined_call_operand.hbm [shape: f32[16,32], index: 2, kind: output, shape index: {}]  }
   0x1   :  { %9 = vsyncpa [#allocation3 + $0x1], 0 }
   0x2   :  { %10 = vsyncpa [#allocation6], 0 }
   0x3   :  { %11 = vsyncpa [#allocation4], 0 }
   0x4   :  { %13 = vsyncpa [#allocation4 + $0x1], 0  ;;  %s519_s9 = smov 0   ;;  %s521_s10 = smov 0  }
   0x5   :  { %s523_s11 = smov 0   ;;  %s525_s12 = smov 0  }
   0x6 LB: > { %s540_s13 = sadd.s32 4294967295, %s501_s12   ;;  %s297_s14 = sadd.s32 4294967294, %s501_s12   ;;  %s501_s12 = sphi %s525_s12, %s671_s12   ;;  %s497_s11 = sphi %s523_s11, %s670_s11   ;;  %s493_s10 = sphi %s521_s10, %s669_s10   ;;  %s489_s9 = sphi %s519_s9, %s668_s9  }
   0x7   : > { %p39_p0 = scmp.ne.s32.totalorder %s493_s10, %s489_s9  ;;  %p40_p1 = scmp.eq.s32.totalorder %s540_s13, 0 }
   0x8   : > { %p84_p2 = scmp.eq.s32.totalorder %s540_s13, 1  ;;  %p90_p3 = scmp.eq.s32.totalorder %s297_s14, 1 }
   0x9   : > { %p549_p4 = por %p40_p1, %p39_p0  ;;  %p298_p5 = scmp.ge.s32.totalorder %s501_s12, 1 }
   0xa   : > { %p554_p6 = por %p90_p3, %p39_p0  ;;  %p97_p7 = scmp.lt.s32.totalorder %s501_s12, 3 }
   0xb   : > { %s109_s19 = sshll.u32 %s660_s1, 4  ;;  %s503_s21 = smov [#allocation5]   ;;  %s110_s19 = int_to_ptr.hbm [resolvable:$true] %s109_s19 }
   0xc   : > { %p562_p8 = pnand %p298_p5, %p97_p7  ;;  %s111_s22 = sshll.u32 %s503_s21, 4  ;;  %s112_s22 = int_to_ptr.vmem [resolvable:$true] %s111_s22 }
   0xd   : > { %s572_s23 = sadd.s32 1, %s501_s12   ;;  %s26_s24 = sadd.s32 1, %s497_s11 }
   0xe   : > { %p319_p10 = pneg %p562_p8  ;;  %s23_s25 = ssub.s32 %s501_s12, %s572_s23 }
   0xf   : > { %p24_p12 = scmp.eq.s32.totalorder %s23_s25, 0  ;;  %p33_p13 = scmp.ne.s32.totalorder %s497_s11, %s493_s10 }
  0x10   : > { %p320_p11 = pnand %p319_p10, %p40_p1  ;;  %p34_p0 = scmp.eq.s32.totalorder %s501_s12, 0 }
  0x11   : > { %s581_s26 = scalar_select %p24_p12, %s497_s11, %s26_s24  }
  0x12   : > { %322 = dma.hbm_to_vmem [thread:$0]  (!%p320_p11), %s110_s19, 16, %s112_s22, [#allocation6]  }
  0x13   : > { %p585_p3 = por %p84_p2, %p33_p13  ;;  %p332_p5 = scmp.lt.s32.totalorder %s501_s12, 2 }
  0x14   : > { %s122_s28 = sand.u32 1, %s497_s11   ;;  %s302_s29 = sshll.u32 %s501_s12, 3 }
  0x15   : > { %p35_p7 = por %p34_p0, %p33_p13  ;;  %s301_s30 = sshll.u32 %s122_s28, 3 }
  0x16   : > { %s130_s5 = scalar_lea.hbm %s659_s0, %s302_s29  ;;  %s126_s7 = scalar_lea.vmem [#allocation2], %s301_s30 }
  0x17   : > { %s132_s6 = sshll.u32 %s130_s5, 4  ;;  %s134_s8 = sshll.u32 %s126_s7, 4  ;;  %s133_s6 = int_to_ptr.hbm [resolvable:$true] %s132_s6  ;;  %s135_s8 = int_to_ptr.vmem [resolvable:$true] %s134_s8 }
  0x18   : > { %p595_p10 = pnand %p332_p5, %p35_p7  ;;  %s123_s17 = scalar_lea.sflag [#allocation3], %s122_s28 }
  0x19   : > { %s401_s18 = sshra.s32 %s133_s6, 4  ;;  %s408_s24 = scalar_lea.hbm %s659_s0, 16  ;;  %s402_s18 = int_to_ptr.hbm [resolvable:$true] %s401_s18 }
  0x1a   : > { %s403_s19 = scalar_lea.hbm %s402_s18, 8  ;;  %p405_p11 = pneg %p595_p10 }
  0x1b   : > { %p404_p2 = scmp.ne.s32.totalorder %s402_s18, %s403_s19  ;;  %p409_p0 = scmp.lt.s32.totalorder %s402_s18, %s659_s0 }
  0x1c   : > { %p410_p5 = scmp.lt.s32.totalorder %s408_s24, %s403_s19 }
  0x1d   : > { %p406_p12 = pnand %p405_p11, %p404_p2 }
  0x1e   : > { %p411_p7 = por %p410_p5, %p409_p0 }
  0x1f   : > { %p407_p13 = pneg %p406_p12 }
  0x21   : > { %p412_p9 = pnand %p411_p7, %p407_p13 }
  0x23   : > { %415 = shalt.err (!%p412_p9)
}
  0x24   : > { %326 = dma.hbm_to_vmem [thread:$0]  (!%p595_p10), %s133_s6, 128, %s135_s8, %s123_s17  }
  0x25   : > { %143 = sbr.rel (%p562_p8) target bundleno = 192 (0xc0), region = 28  ;;  %s612_s28 = sand.u32 (!%p562_p8), 1, %s493_s10  }
  0x26   : > { %s304_s30 = sshll.u32 (!%p562_p8), %s612_s28, 3  ;;  %s146_s3 = scalar_lea.sflag (!%p562_p8), [#allocation3], %s612_s28 }
  0x27   : > { %s149_s4 = scalar_lea.vmem (!%p562_p8), [#allocation2], %s304_s30 }
  0x2a   : > { %476 = dma.done.wait (%p549_p4), %s146_s3, 128  }
  0x2b   : > { %478 = vsyncadd (%p549_p4), %s146_s3, 4294967168 }
  0x2c   : > { %480 = dma.done.wait (%p40_p1), [#allocation6], 16  }
  0x2d   : > { %482 = vsyncadd (%p40_p1), [#allocation6], 4294967280  ;;  %v176_v0 = vld [vmem:[%s149_s4] sm:$0xff]  ;;  %vm179_vm0 = vcmask 261120   ;;  %s308_s15 = sshll.u32 %s540_s13, 3  ;;  %s175_s7 = scalar_lea.vmem [#allocation7], %s304_s30 }
  0x2e   : > { %v178_v1 = vmul.f32 %v176_v0, %v176_v0  ;;  %v368_v9 = vld [vmem:[#allocation5] ss:$0 sm:$0xff]  ;;  %s212_s6 = scalar_lea.hbm %s661_s2, %s308_s15  ;;  %s214_s8 = sshll.u32 %s175_s7, 4  ;;  %s215_s8 = int_to_ptr.vmem [resolvable:$true] %s214_s8 }
  0x2f   : > { %v198_v12 = vmul.f32 %v368_v9, %v176_v0  ;;  %s216_s14 = sshll.u32 %s212_s6, 4  ;;  %s202_s13 = scalar_lea.sflag [#allocation4], %s612_s28  ;;  %s217_s14 = int_to_ptr.hbm [resolvable:$true] %s216_s14 }
  0x30   : > { %v180_v2 = vsel %vm179_vm0, %v178_v1, 0.0  ;;  %s445_s17 = sshra.s32 %s217_s14, 4  ;;  %s451_s22 = scalar_lea.hbm %s661_s2, 16  ;;  %s446_s17 = int_to_ptr.hbm [resolvable:$true] %s445_s17 }
  0x31   : > { %181 = vadd.xlane.f32.xlu0 %v180_v2  ;;  %s447_s18 = scalar_lea.hbm %s446_s17, 8  ;;  %p452_p9 = scmp.lt.s32.totalorder %s446_s17, %s661_s2 }
  0x32   : > { %p448_p1 = scmp.ne.s32.totalorder %s446_s17, %s447_s18  ;;  %p453_p10 = scmp.lt.s32.totalorder %s451_s22, %s447_s18 }
  0x34   : > { %p449_p4 = pnand %p448_p1, %p585_p3  ;;  %p454_p2 = por %p453_p10, %p452_p9 }
  0x36   : > { %p450_p8 = pneg %p449_p4 }
  0x38   : > { %p455_p11 = pnand %p454_p2, %p450_p8 }
  0xa4   : > { %v182_v3 = vpop.xlane.xlu0 %181 }
  0xa5   : > { %v183_v4 = vmul.f32 0.03125, %v182_v3 }
  0xa7   : > { %v184_v5 = vadd.f32 1e-05, %v183_v4 }
  0xa9   : > { %369 = vrsqrt.f32 %v184_v5  ;;  %vm191_vm2 = vweird.f32 %v184_v5 }
  0xaf   : > { %v370_v6 = vpop.eup %369 }
  0xb0   : > { %v186_v7 = vmul.f32 %v370_v6, %v184_v5  ;;  %vm192_vm1 = vweird.f32 %v370_v6 }
  0xb1   : > { %vm193_vm3 = vmor %vm191_vm2, %vm192_vm1 }
  0xb2   : > { %v187_v8 = vmul.f32 %v370_v6, %v186_v7 }
  0xb4   : > { %v188_v10 = vmul.f32 0.5, %v187_v8 }
  0xb6   : > { %v189_v11 = vsub.f32 1.5, %v188_v10 }
  0xb8   : > { %v190_v13 = vmul.f32 %v370_v6, %v189_v11 }
  0xba   : > { %v194_v14 = vsel %vm193_vm3, %v370_v6, %v190_v13 }
  0xbb   : > { %v199_v15 = vmul.f32 %v198_v12, %v194_v14 }
  0xbd   : > { %200 = vst.msk [vmem:[%s175_s7] sm:$0xff] %vm179_vm0, %v199_v15 }
  0xbe   : > { %458 = shalt.err (!%p455_p11)
}
  0xbf   : > { %317 = dma.vmem_to_hbm [thread:$0]  (%p585_p3), %s215_s8, 128, %s217_s14, %s202_s13  }
  0xc0 PF: > { %s228_s29 = sand.u32 1, %s489_s9   ;;  %p667_p12 = scmp.ge.s32.totalorder %s501_s12, 2 }
  0xc1   : > { %s229_s28 = scalar_lea.sflag [#allocation4], %s228_s29 }
  0xc2   : > { %p328_p13 = pnand %p667_p12, %p554_p6 }
  0xc4   : > { %p329_p0 = pneg %p328_p13 }
  0xc6   : > { %484 = dma.done.wait (%p329_p0), %s229_s28, 128  }
  0xc7   : > { %486 = vsyncadd (%p329_p0), %s229_s28, 4294967168  ;;  %p16_p5 = scmp.ge.s32.totalorder %s572_s23, 4   ;;  %s668_s9 = smov %s493_s10 }
  0xc8   : > { %s669_s10 = smov %s497_s11  ;;  %s670_s11 = smov %s581_s26 }
  0xc9   : > { %s671_s12 = smov %s572_s23  ;;  %18 = sbr.rel (!%p16_p5) target bundleno = 6 (0x6), region = 77 }
  0xce   :  { %235 = vsyncpa [#allocation3], 1 }
  0xcf   :  { %237 = vsyncpa [#allocation3 + $0x1], 1 }
  0xd0   :  { %238 = vsyncpa [#allocation6], 1 }
  0xd1   :  { %239 = vsyncpa [#allocation4], 1 }
  0xd2   :  { %241 = vsyncpa [#allocation4 + $0x1], 1 }

</bundles_post_ra>
